<compile_context>
chip_gen: v7x
topology: tpu7x:2x2x1
jax: 0.10.0
libtpu: 0.0.40
codegen_flags: <defaults>
</compile_context>

<pallas_src>
import jax
import jax.numpy as jnp
from jax.experimental import pallas as pl
from jax.experimental.pallas import tpu as pltpu


# ---------------------------------------------------------------------------
# Kernels
# ---------------------------------------------------------------------------

def _fma_kernel(x_ref, w_ref, b_ref, o_ref):
    """General elementwise path.  x:(tB,F,1)  w,b:(F,D)  o:(tB,F,D)."""
    x = x_ref[...]                      # (tB, F, 1) -- lane splat on use
    w = w_ref[...]                      # (F, D)
    b = b_ref[...]                      # (F, D)
    o_ref[...] = (x * w[None] + b[None]).astype(o_ref.dtype)


def _dense_kernel(x_ref, we_ref, bf_ref, o_ref):
    """Lane-dense path.  x:(tB,F)  we:(F,F*D) block-diag  bf:(1,F*D)  o:(tB,F*D)."""
    acc = jnp.dot(x_ref[...], we_ref[...], preferred_element_type=jnp.float32)
    o_ref[...] = (acc + bf_ref[...]).astype(o_ref.dtype)


# ---------------------------------------------------------------------------
# Wrapper
# ---------------------------------------------------------------------------

_LANE = 128
_OUT_BLOCK_BYTES = 3 * 1024 * 1024      # per output buffer (x2 for double-buffer)
_DENSE_WEIGHT_BYTES = 2 * 1024 * 1024   # max size of the expanded (F, F*D) weight
_MIN_PALLAS_OUT_BYTES = 256 * 1024      # below this, plain jnp wins


def _choose_block_rows(batch, row_bytes):
    rows = max(8, (_OUT_BLOCK_BYTES // max(row_bytes, 1)) // 8 * 8)
    if rows >= batch:
        return batch                     # single block, full extent -> legal
    return rows                          # multiple of 8 -> legal second-minor dim


def numerical_feature_tokenizer(x, weight, bias=None, *,
                                force_pallas=False, layout="auto"):
    """x: (B, F) -> (B, F, D) with out[b, f, :] = weight[f] * x[b, f] + bias[f]."""
    B, F = x.shape
    Fw, D = weight.shape
    assert F == Fw, "x and weight disagree on the number of features"
    if bias is None:
        bias = jnp.zeros_like(weight)
    assert bias.shape == (F, D)

    out_dtype = jnp.result_type(x.dtype, weight.dtype, bias.dtype)
    elt = jnp.dtype(out_dtype).itemsize
    out_bytes = B * F * D * elt

    if not force_pallas and out_bytes < _MIN_PALLAS_OUT_BYTES:
        # pallas_call launch / per-step overhead dwarfs ~KiB of work;
        # XLA fuses this broadcast-FMA for free.
        return (weight[None] * x[..., None] + bias[None]).astype(out_dtype)

    if layout == "auto":
        use_dense = (D % _LANE != 0) and (F * F * D * elt <= _DENSE_WEIGHT_BYTES)
    else:
        use_dense = (layout == "dense")

    row_bytes = F * D * elt
    tb = _choose_block_rows(B, row_bytes)
    grid = (pl.cdiv(B, tb),)

    cost = pl.CostEstimate(
        flops=2 * B * F * D,
        transcendentals=0,
        bytes_accessed=(x.size * x.dtype.itemsize
                        + weight.size * weight.dtype.itemsize
                        + bias.size * bias.dtype.itemsize
                        + out_bytes),
    )
    params = pltpu.CompilerParams(dimension_semantics=("parallel",))

    if use_dense:
        # Fold the per-feature scale into a block-diagonal (F, F*D) matrix so
        # the stored last dim is F*D (lane-dense, full vst + dense DMA) instead
        # of D (masked vst).  Exact for finite inputs; NOTE: a non-finite
        # feature value would leak NaNs across features via the 0 entries.
        we = (jnp.eye(F, dtype=weight.dtype)[:, :, None] * weight[None]
              ).reshape(F, F * D)
        bf = bias.reshape(1, F * D)
        out2d = pl.pallas_call(
            _dense_kernel,
            out_shape=jax.ShapeDtypeStruct((B, F * D), out_dtype),
            grid=grid,
            in_specs=[
                pl.BlockSpec((tb, F), lambda i: (i, 0)),
                pl.BlockSpec((F, F * D), lambda i: (0, 0)),   # VMEM-resident
                pl.BlockSpec((1, F * D), lambda i: (0, 0)),   # VMEM-resident
            ],
            out_specs=pl.BlockSpec((tb, F * D), lambda i: (i, 0)),
            compiler_params=params,
            cost_estimate=cost,
        )(x, we, bf)
        return out2d.reshape(B, F, D)

    # General elementwise path (D already lane-dense, or F too large to expand).
    x3 = x[:, :, None]                   # feed x in the layout it is consumed in
    return pl.pallas_call(
        _fma_kernel,
        out_shape=jax.ShapeDtypeStruct((B, F, D), out_dtype),
        grid=grid,
        in_specs=[
            pl.BlockSpec((tb, F, 1), lambda i: (i, 0, 0)),
            pl.BlockSpec((F, D), lambda i: (0, 0)),           # VMEM-resident
            pl.BlockSpec((F, D), lambda i: (0, 0)),           # VMEM-resident
        ],
        out_specs=pl.BlockSpec((tb, F, D), lambda i: (i, 0, 0)),
        compiler_params=params,
        cost_estimate=cost,
    )(x3, weight, bias)


# ---------------------------------------------------------------------------
# Demo / correctness check
# ---------------------------------------------------------------------------

if __name__ == "__main__":
    in_features = 4   # F
    d_token = 32      # D
    batch = 2         # B

    key = jax.random.PRNGKey(0)
    kx, kw, kb = jax.random.split(key, 3)

    # Deterministic "normal" init with std = d_token**-0.5
    # (matches _TokenInitialization('normal')).
    d_inv = d_token ** -0.5
    x = jax.random.normal(kx, (batch, in_features), dtype=jnp.float32)
    weight = d_inv * jax.random.normal(kw, (in_features, d_token), dtype=jnp.float32)
    bias = d_inv * jax.random.normal(kb, (in_features, d_token), dtype=jnp.float32)

    # Pure-JAX reference.
    ref = weight[None] * x[..., None] + bias[None]

    # Lane-dense (block-diag matmul) path -- what 'auto' picks for d_token=32.
    out_dense = jax.block_until_ready(
        numerical_feature_tokenizer(x, weight, bias, force_pallas=True,
                                    layout="dense"))
    # General elementwise broadcast path.
    out_fma = jax.block_until_ready(
        numerical_feature_tokenizer(x, weight, bias, force_pallas=True,
                                    layout="fma"))

    assert out_dense.shape == (batch, in_features, d_token)
    assert out_fma.shape == (batch, in_features, d_token)
    assert jnp.allclose(out_fma, ref, atol=1e-6, rtol=1e-6)
    assert jnp.allclose(out_dense, ref, atol=1e-6, rtol=1e-5)  # MXU f32 path

    print("KERNEL_OK")
</pallas_src>

<mosaic_0001>
module attributes {stable_mosaic.version = 11 : i64} {
  func.func @_dense_kernel(%arg0: i32, %arg1: memref<2x4xf32, #tpu.memory_space<vmem>>, %arg2: memref<4x128xf32, #tpu.memory_space<vmem>>, %arg3: memref<1x128xf32, #tpu.memory_space<vmem>>, %arg4: memref<2x128xf32, #tpu.memory_space<vmem>>) attributes {dimension_semantics = [#tpu.dimension_semantics<parallel>], iteration_bounds = array<i64: 1>, scalar_prefetch = 0 : i64, scratch_operands = 0 : i64, tpu.core_type = #tpu.core_type<tc>, window_params = [{transform_indices = @transform_0, window_bounds = array<i64: 2, 4>}, {pipeline_mode = #tpu.pipeline_mode<synchronous>, transform_indices = @transform_1, window_bounds = array<i64: 4, 128>}, {pipeline_mode = #tpu.pipeline_mode<synchronous>, transform_indices = @transform_2, window_bounds = array<i64: 1, 128>}, {transform_indices = @transform_3, window_bounds = array<i64: 2, 128>}]} {
    %c0 = arith.constant 0 : index
    %c0_0 = arith.constant 0 : index
    %0 = vector.load %arg1[%c0, %c0_0] : memref<2x4xf32, #tpu.memory_space<vmem>>, vector<2x4xf32>
    %c0_1 = arith.constant 0 : index
    %c0_2 = arith.constant 0 : index
    %1 = vector.load %arg2[%c0_1, %c0_2] : memref<4x128xf32, #tpu.memory_space<vmem>>, vector<4x128xf32>
    %cst = arith.constant dense<0.000000e+00> : vector<2x128xf32>
    %2 = tpu.matmul %0, %1, %cst {dimension_numbers = #tpu.dot_dimension_numbers<[1], [0], [0], [1], [0, 0, 1, 1], [], []>} : vector<2x4xf32>, vector<4x128xf32>, vector<2x128xf32> -> vector<2x128xf32>
    %c0_3 = arith.constant 0 : index
    %c0_4 = arith.constant 0 : index
    %3 = vector.load %arg3[%c0_3, %c0_4] : memref<1x128xf32, #tpu.memory_space<vmem>>, vector<1x128xf32>
    %4 = vector.broadcast %3 : vector<1x128xf32> to vector<2x128xf32>
    %5 = arith.addf %2, %4 : vector<2x128xf32>
    %c0_5 = arith.constant 0 : index
    %c0_6 = arith.constant 0 : index
    %6 = vector.load %arg4[%c0_5, %c0_6] : memref<2x128xf32, #tpu.memory_space<vmem>>, vector<2x128xf32>
    tpu.vector_store %arg4[%c0_5, %c0_6], %5 {strides = array<i32>} : memref<2x128xf32, #tpu.memory_space<vmem>>, vector<2x128xf32>,
    return
  }
  func.func @transform_0(%arg0: i32) -> (i32, i32) {
    %c0_i32 = arith.constant 0 : i32
    %c0_i32_0 = arith.constant 0 : i32
    return %arg0, %c0_i32 : i32, i32
  }
  func.func @transform_1(%arg0: i32) -> (i32, i32) {
    %c0_i32 = arith.constant 0 : i32
    %c0_i32_0 = arith.constant 0 : i32
    %c0_i32_1 = arith.constant 0 : i32
    return %c0_i32, %c0_i32_0 : i32, i32
  }
  func.func @transform_2(%arg0: i32) -> (i32, i32) {
    %c0_i32 = arith.constant 0 : i32
    %c0_i32_0 = arith.constant 0 : i32
    %c0_i32_1 = arith.constant 0 : i32
    return %c0_i32, %c0_i32_0 : i32, i32
  }
  func.func @transform_3(%arg0: i32) -> (i32, i32) {
    %c0_i32 = arith.constant 0 : i32
    %c0_i32_0 = arith.constant 0 : i32
    return %arg0, %c0_i32 : i32, i32
  }
}

</mosaic_0001>

<bundles_post_ra>
// kernel: tpu_custom_call.1
= control target key start
LH: loop header
LB: loop body
LE: loop exit
PB: predicated region body
PF: predicated region fallthrough
CT: control target
= control target key end

     0   :  { %8 = vsyncpa [#allocation3], 0  ;;  %s294_s0 = inlined_call_operand.hbm [shape: f32[2,4], index: 0, kind: input, shape index: {}]   ;;  %s295_s1 = inlined_call_operand.hbm [shape: f32[4,128], index: 1, kind: input, shape index: {}]   ;;  %s296_s2 = inlined_call_operand.vmem [shape: f32[1,128], index: 2, kind: input, shape index: {}]   ;;  %s297_s3 = inlined_call_operand.hbm [shape: f32[2,128], index: 3, kind: output, shape index: {}]  }
   0x1   :  { %9 = vsyncpa [#allocation6], 0 }
   0x2   :  { %10 = vsyncpa [#allocation4], 0  ;;  %s230_s12 = smov [#allocation2]   ;;  %s231_s14 = smov [#allocation5]  }
   0x3   :  { %s17_s13 = sshll.u32 %s230_s12, 4  ;;  %s27_s15 = sshll.u32 %s231_s14, 4  ;;  %s18_s13 = int_to_ptr.vmem [resolvable:$true] %s17_s13  ;;  %s28_s15 = int_to_ptr.vmem [resolvable:$true] %s27_s15 }
   0x4   :  { %s158_s18 = scalar_lea.hbm %s294_s0, 32 }
   0x5   :  { %p159_p0 = scmp.ne.s32.totalorder %s294_s0, %s158_s18  ;;  %p162_p1 = scmp.lt.u32.totalorder %s158_s18, %s294_s0 }
   0x7   :  { %p164_p2 = pnand %p162_p1, %p159_p0 }
   0x9   :  { %167 = shalt.err (!%p164_p2)
}
   0xa   :  { %s168_s23 = scalar_lea.vmem %s18_s13, 32  ;;  %p173_p4 = scmp.lt.s32.totalorder %s18_s13, %s18_s13 }
   0xb   :  { %p169_p3 = scmp.ne.s32.totalorder %s18_s13, %s168_s23  ;;  %p174_p5 = scmp.lt.s32.totalorder %s168_s23, %s168_s23 }
   0xd   :  { %p175_p6 = por %p174_p5, %p173_p4 }
   0xf   :  { %p176_p7 = pnand %p175_p6, %p169_p3 }
  0x11   :  { %179 = shalt.err (!%p176_p7)
}
  0x12   :  { %20 = dma.hbm_to_vmem [thread:$0]  %s294_s0, 32, %s18_s13, [#allocation3]  }
  0x13   :  { %s180_s28 = scalar_lea.hbm %s295_s1, 64 }
  0x14   :  { %p181_p8 = scmp.ne.s32.totalorder %s295_s1, %s180_s28  ;;  %p184_p9 = scmp.lt.u32.totalorder %s180_s28, %s295_s1 }
  0x16   :  { %p186_p10 = pnand %p184_p9, %p181_p8 }
  0x18   :  { %189 = shalt.err (!%p186_p10)
}
  0x19   :  { %s190_s6 = scalar_lea.vmem %s28_s15, 64  ;;  %p195_p12 = scmp.lt.s32.totalorder %s28_s15, %s28_s15 }
  0x1a   :  { %p191_p11 = scmp.ne.s32.totalorder %s28_s15, %s190_s6  ;;  %p196_p13 = scmp.lt.s32.totalorder %s190_s6, %s190_s6 }
  0x1c   :  { %p197_p0 = por %p196_p13, %p195_p12 }
  0x1e   :  { %p198_p1 = pnand %p197_p0, %p191_p11 }
  0x20   :  { %201 = shalt.err (!%p198_p1)
}
  0x21   :  { %30 = dma.hbm_to_vmem [thread:$0]  %s295_s1, 64, %s28_s15, [#allocation6]  }
  0x22   :  { %224 = dma.done.wait [#allocation3], 32  }
  0x23   :  { %225 = vsyncadd [#allocation3], 4294967264 }
  0x24   :  { %226 = dma.done.wait [#allocation6], 64  }
  0x25   :  { %227 = vsyncadd [#allocation6], 4294967232  ;;  %v232_v0 = vmov 0.0   ;;  %vm233_vm0 = vmmov 0   ;;  %vm52_vm1 = vcmask 1043456   ;;  %vm48_vm2 = vcmask 31744  }
  0x26   :  { %148 = vmatprep.subr.mxu0 %v232_v0  ;;  %150 = vmatprep.mubr.msk.f32.mxu0 %vm233_vm0, %v232_v0  ;;  %v40_v1 = vld [vmem:[#allocation5] sm:$0xf]  ;;  %v39_v2 = vld [vmem:[#allocation2] sm:$0x3]  ;;  %s234_s10 = smov [#allocation7]  }
  0x27   :  { %149 = vmatpush3.msk.msra.mxu0 %vm52_vm1, %v40_v1  ;;  %v143_v3 = vld [vmem:[%s296_s2] ss:$0 sm:$0xff]  ;;  %s133_s1 = sshll.u32 %s234_s10, 4  ;;  %s134_s1 = int_to_ptr.vmem [resolvable:$true] %s133_s1 }
  0x28   :  { %151 = vmatmul.mubr.msk.f32.vlgmr.msra.gmra.mrb[0].mxu0 %vm48_vm2, %v39_v2  ;;  %s202_s11 = scalar_lea.vmem %s134_s1, 32  ;;  %p207_p3 = scmp.lt.s32.totalorder %s134_s1, %s134_s1 }
  0x29   :  { %p203_p2 = scmp.ne.s32.totalorder %s134_s1, %s202_s11  ;;  %p208_p4 = scmp.lt.s32.totalorder %s202_s11, %s202_s11 }
  0x2b   :  { %p209_p5 = por %p208_p4, %p207_p3 }
  0x2d   :  { %p210_p6 = pnand %p209_p5, %p203_p2 }
  0xfb   :  { %v122_v4 = vpop.f32.mrb[0].mxu0 }
  0xfc   :  { %v123_v5 = vadd.f32 %v143_v3, %v122_v4  ;;  %v152_v6 = vpop.f32.mrb[1].mxu0 }
  0xfe   :  { %126 = vst [vmem:[#allocation7] sm:$0x3] %v123_v5 }
  0xff   :  { %213 = shalt.err (!%p210_p6)
}
 0x100   :  { %s214_s14 = scalar_lea.hbm %s297_s3, 32 }
 0x101   :  { %p215_p7 = scmp.ne.s32.totalorder %s297_s3, %s214_s14  ;;  %p218_p8 = scmp.lt.u32.totalorder %s214_s14, %s297_s3 }
 0x103   :  { %p220_p9 = pnand %p218_p8, %p215_p7 }
 0x105   :  { %223 = shalt.err (!%p220_p9)
}
 0x106   :  { %136 = dma.vmem_to_hbm [thread:$0]  %s134_s1, 32, %s297_s3, [#allocation4]  }
 0x107   :  { %228 = dma.done.wait [#allocation4], 32  }
 0x108   :  { %229 = vsyncadd [#allocation4], 4294967264 }
 0x109   :  { %140 = vsyncpa [#allocation3], 1 }
 0x10a   :  { %141 = vsyncpa [#allocation6], 1 }
 0x10b   :  { %142 = vsyncpa [#allocation4], 1 }

</bundles_post_ra>
